<compile_context>
chip_gen: v7x
topology: tpu7x:2x2x1
jax: 0.10.0
libtpu: 0.0.40
codegen_flags: <defaults>
</compile_context>

<pallas_src>
import jax
import jax.numpy as jnp
from jax.experimental import pallas as pl
from jax.experimental.pallas import tpu as pltpu

_DMA_DEPTH = 4                          # max DMAs in flight per grid step
_TARGET_BLOCK_BYTES = 16 * 1024 * 1024  # target bytes handled per grid step
_MIN_SPLIT_BYTES = 2 * 1024 * 1024      # split into >=2 blocks above this (v7x megacore)
_MIN_DMA_BYTES = 1 * 1024 * 1024        # don't split a block into DMAs smaller than this
_WIDTHS = (2048, 1024, 512, 256, 128)   # preferred 2-D view widths (row granularity)


def _choose_width(n: int) -> int:
    """Widest convenient last dim dividing n; 1 if none (DMA has no lane constraint)."""
    for w in _WIDTHS:
        if n % w == 0:
            return w
    return 1


def _even_split(nrows: int, max_pieces: int):
    """Split nrows into <= max_pieces contiguous, statically-sized pieces."""
    pieces = max(1, min(max_pieces, nrows))
    base, extra = divmod(nrows, pieces)
    out, off = [], 0
    for p in range(pieces):
        sz = base + (1 if p < extra else 0)
        out.append((off, sz))
        off += sz
    return out


def _make_hbm_copy_kernel(block_rows: int, rem_rows: int, num_blocks: int, depth: int):
    """Kernel: this grid step copies its row-block of the 2-D view HBM->HBM."""

    def kernel(x_hbm, o_hbm, sems):
        i = pl.program_id(0)

        def do_copy(row_start, nrows):
            # Start up to `depth` DMAs on distinct semaphores, then wait all.
            copies = []
            for s, (off, sz) in enumerate(_even_split(nrows, depth)):
                cp = pltpu.make_async_copy(
                    x_hbm.at[pl.ds(row_start + off, sz), :],
                    o_hbm.at[pl.ds(row_start + off, sz), :],
                    sems.at[s],
                )
                cp.start()
                copies.append(cp)
            for cp in copies:
                cp.wait()

        if rem_rows == block_rows:
            # All blocks are the same size.
            do_copy(i * block_rows, block_rows)
        else:
            @pl.when(i < num_blocks - 1)
            def _():
                do_copy(i * block_rows, block_rows)

            @pl.when(i == num_blocks - 1)
            def _():
                do_copy((num_blocks - 1) * block_rows, rem_rows)

    return kernel


def _identity_copy_pallas(x: jax.Array) -> jax.Array:
    """Materialized identity copy via direct HBM->HBM DMA."""
    orig_shape = x.shape
    n = x.size
    if n == 0:
        return x
    itemsize = jnp.dtype(x.dtype).itemsize

    # 2-D view purely to define the DMA chunking granularity.
    width = _choose_width(n)
    rows = n // width
    row_bytes = width * itemsize
    total_bytes = rows * row_bytes

    # Number of grid steps ("parallel" -> shards across TensorCores on v7x).
    num_blocks = pl.cdiv(total_bytes, _TARGET_BLOCK_BYTES)
    if total_bytes >= _MIN_SPLIT_BYTES:
        num_blocks = max(num_blocks, 2)
    num_blocks = max(1, min(num_blocks, rows))
    block_rows = pl.cdiv(rows, num_blocks)
    num_blocks = pl.cdiv(rows, block_rows)
    rem_rows = rows - (num_blocks - 1) * block_rows

    # Sub-chunk depth per block: keep 2-4 DMAs in flight, but never issue
    # DMAs smaller than ~1 MiB (descriptor overhead).
    depth = max(1, min(_DMA_DEPTH, block_rows, (block_rows * row_bytes) // _MIN_DMA_BYTES))

    kernel = _make_hbm_copy_kernel(block_rows, rem_rows, num_blocks, depth)

    # Advisory cost: pure HBM read + write, no compute.
    ce = pl.CostEstimate(flops=0, transcendentals=0, bytes_accessed=2 * n * itemsize)

    x2 = x.reshape(rows, width)
    y2 = pl.pallas_call(
        kernel,
        out_shape=jax.ShapeDtypeStruct((rows, width), x.dtype),
        grid_spec=pltpu.PrefetchScalarGridSpec(
            num_scalar_prefetch=0,
            grid=(num_blocks,),
            in_specs=[pl.BlockSpec(memory_space=pl.ANY)],   # raw HBM ref, no auto-DMA
            out_specs=pl.BlockSpec(memory_space=pl.ANY),    # raw HBM ref, no auto-DMA
            scratch_shapes=[pltpu.SemaphoreType.DMA((depth,))],
        ),
        compiler_params=pltpu.CompilerParams(
            dimension_semantics=("parallel",),
        ),
        cost_estimate=ce,
    )(x2)
    return y2.reshape(orig_shape)


def positional_embedding_forward(x: jax.Array, *, materialize: bool = False) -> jax.Array:
    """PositionalEmbedding.forward (identity).

    Default: return x directly (zero cost).  Set materialize=True to force a
    fresh output buffer via a direct HBM->HBM DMA streaming copy (use this if
    the caller later donates/aliases x).
    """
    if not materialize:
        return x
    return _identity_copy_pallas(x)


class PositionalEmbedding:
    """JAX/Pallas mirror of the PyTorch base class (no parameters)."""

    def __init__(self, in_channels: int = 3) -> None:
        self.in_channels = in_channels

    @property
    def out_channels(self) -> int:
        raise NotImplementedError("out_channels not implemented")

    def __call__(self, x: jax.Array, *, materialize: bool = False) -> jax.Array:
        return positional_embedding_forward(x, materialize=materialize)


if __name__ == "__main__":
    key = jax.random.PRNGKey(0)
    # Small NCHW input consistent with the module.
    B, C, H, W = 2, 4, 16, 16
    x = jax.random.normal(key, (B, C, H, W), dtype=jnp.float32)

    module = PositionalEmbedding(in_channels=C)

    # Fast path: identity, zero-cost (the recommended default).
    y_fast = jax.block_until_ready(module(x))
    assert y_fast.shape == x.shape and y_fast.dtype == x.dtype
    assert bool(jnp.array_equal(y_fast, x))

    # Materialized path: single HBM->HBM DMA (small array -> one block).
    y_kernel = jax.block_until_ready(module(x, materialize=True))
    assert y_kernel.shape == x.shape and y_kernel.dtype == x.dtype
    assert bool(jnp.array_equal(y_kernel, x))

    # Coverage: element count not divisible by 128 -> (n, 1) view, still DMA'd.
    x_odd = jax.random.normal(jax.random.PRNGKey(1), (2, 3, 37, 13), dtype=jnp.float32)
    y_odd = jax.block_until_ready(positional_embedding_forward(x_odd, materialize=True))
    assert bool(jnp.array_equal(y_odd, x_odd))

    # Coverage: multi-block parallel grid, 4 DMAs in flight, ragged last block.
    x_big = jax.random.normal(jax.random.PRNGKey(2), (1049, 2048), dtype=jnp.float32)
    y_big = jax.block_until_ready(positional_embedding_forward(x_big, materialize=True))
    assert bool(jnp.array_equal(y_big, x_big))

    print("KERNEL_OK")
</pallas_src>

<mosaic_0001>
module attributes {stable_mosaic.version = 11 : i64} {
  func.func @kernel(%arg0: i32, %arg1: memref<1x2048xf32, #tpu.memory_space<any>>, %arg2: memref<1x2048xf32, #tpu.memory_space<any>>, %arg3: memref<1x!tpu.dma_semaphore, #tpu.memory_space<semaphore_mem>>) attributes {dimension_semantics = [#tpu.dimension_semantics<parallel>], iteration_bounds = array<i64: 1>, scalar_prefetch = 0 : i64, scratch_operands = 1 : i64, tpu.core_type = #tpu.core_type<tc>, window_params = [{}, {}]} {
    %c1_i32 = arith.constant 1 : i32
    %0 = arith.muli %arg0, %c1_i32 : i32
    %c0_i32 = arith.constant 0 : i32
    %1 = arith.addi %0, %c0_i32 : i32
    %c0_i32_0 = arith.constant 0 : i32
    %2 = arith.addi %0, %c0_i32_0 : i32
    %c0_i32_1 = arith.constant 0 : i32
    %c0_i32_2 = arith.constant 0 : i32
    %3 = tpu.memref_slice %arg1[%1, %c0_i32_2] : memref<1x2048xf32, #tpu.memory_space<any>> -> memref<1x2048xf32, #tpu.memory_space<any>>
    %c0_i32_3 = arith.constant 0 : i32
    %4 = tpu.memref_slice %arg2[%2, %c0_i32_3] : memref<1x2048xf32, #tpu.memory_space<any>> -> memref<1x2048xf32, #tpu.memory_space<any>>
    %5 = tpu.memref_slice %arg3[%c0_i32_1] : memref<1x!tpu.dma_semaphore, #tpu.memory_space<semaphore_mem>> -> memref<1x!tpu.dma_semaphore, #tpu.memory_space<semaphore_mem>>
    %6 = tpu.memref_squeeze %5 : memref<1x!tpu.dma_semaphore, #tpu.memory_space<semaphore_mem>> -> memref<!tpu.dma_semaphore, #tpu.memory_space<semaphore_mem>>
    tpu.enqueue_dma source(%3 : memref<1x2048xf32, #tpu.memory_space<any>>) target(%4 : memref<1x2048xf32, #tpu.memory_space<any>>) target_semaphore(%6 : memref<!tpu.dma_semaphore, #tpu.memory_space<semaphore_mem>>)
    %c0_i32_4 = arith.constant 0 : i32
    %c0_i32_5 = arith.constant 0 : i32
    %7 = tpu.memref_slice %arg1[%1, %c0_i32_5] : memref<1x2048xf32, #tpu.memory_space<any>> -> memref<1x2048xf32, #tpu.memory_space<any>>
    %c0_i32_6 = arith.constant 0 : i32
    %8 = tpu.memref_slice %arg2[%2, %c0_i32_6] : memref<1x2048xf32, #tpu.memory_space<any>> -> memref<1x2048xf32, #tpu.memory_space<any>>
    %9 = tpu.memref_slice %arg3[%c0_i32_4] : memref<1x!tpu.dma_semaphore, #tpu.memory_space<semaphore_mem>> -> memref<1x!tpu.dma_semaphore, #tpu.memory_space<semaphore_mem>>
    %10 = tpu.memref_squeeze %9 : memref<1x!tpu.dma_semaphore, #tpu.memory_space<semaphore_mem>> -> memref<!tpu.dma_semaphore, #tpu.memory_space<semaphore_mem>>
    tpu.wait_dma2 semaphore(%10 : memref<!tpu.dma_semaphore, #tpu.memory_space<semaphore_mem>>) src(%7 : memref<1x2048xf32, #tpu.memory_space<any>>) dst(%8 : memref<1x2048xf32, #tpu.memory_space<any>>)
    return
  }
}

</mosaic_0001>

<bundles_post_ra>
// kernel: tpu_custom_call.1
= control target key start
LH: loop header
LB: loop body
LE: loop exit
PB: predicated region body
PF: predicated region fallthrough
CT: control target
= control target key end

     0   :  { %s39_s6 = smov [#allocation2]   ;;  %s40_s7 = smov [#allocation3]   ;;  %s58_s0 = inlined_call_operand.hbm [shape: f32[1,2048], index: 0, kind: input, shape index: {}]   ;;  %s59_s1 = inlined_call_operand.hbm [shape: f32[1,2048], index: 1, kind: output, shape index: {}]  }
   0x1   :  { %s41_s8 = smov 0  }
   0x2   :  { %23 = dma.general %s58_s0, 256, %s59_s1, %s39_s6, %s40_s7, [#allocation4], %s41_s8, 0  }
   0x3   :  { %37 = dma.done.wait [#allocation2], 256 }
   0x4   :  { %38 = vsyncadd [#allocation2], 4294967040 }
   0x5   :  { %27 = vsyncmov [#allocation2] }
   0x8   :  { %s28_s13 = vpop.sfrf %27 }
   0x9   :  { %p33_p0 = scmp.ne.s32.totalorder %s28_s13, 0 }
   0xb   :  { %32 = shalt.err (%p33_p0)  }

</bundles_post_ra>
